<compile_context>
chip_gen: v7x
topology: tpu7x:2x2x1
jax: 0.10.0
libtpu: 0.0.40
codegen_flags: <defaults>
</compile_context>

<pallas_src>
import functools

import jax
import jax.numpy as jnp
from jax import lax
from jax.experimental import pallas as pl
from jax.experimental.pallas import tpu as pltpu


def _dropout_matmul_kernel(seed_ref, probs_ref, v_ref, out_ref, *, p):
    # probs_ref: (T, S, S), v_ref: (T, S, D)  in compute dtype (bf16 by default)
    # out_ref:   (1, S, T*D) f32
    T, S, _ = probs_ref.shape
    D = v_ref.shape[-1]

    first_slab = pl.program_id(0) * T  # index of the first (b*h) slab this step
    # seed mixed with the golden-ratio constant (int32 wraps like uint32).
    seed_mix = seed_ref[0] * (-1640531527)  # 0x9E3779B9 as signed int32

    if p > 0.0:
        # threshold = floor(p * 2^32): keep-probability biased high by < 2^-32
        # (intentional, negligible; do not "fix" into the opposite bias).
        threshold = jnp.uint32(min(int(p * 4294967296.0), 4294967295))

    accs = []
    for t in range(T):  # static unroll, T is small (2 or 4)
        probs_t = probs_ref[t]  # (S, S)
        if p > 0.0:
            # Unique per-element counter (mod 2^32), then splitmix32 finalizer.
            q_i = lax.broadcasted_iota(jnp.int32, (S, S), 0)
            k_i = lax.broadcasted_iota(jnp.int32, (S, S), 1)
            gid = ((first_slab + t) * S + q_i) * S + k_i
            x = (gid + seed_mix).astype(jnp.uint32)
            x = x ^ (x >> 16)
            x = x * jnp.uint32(0x7FEB352D)
            x = x ^ (x >> 15)
            x = x * jnp.uint32(0x846CA68B)
            x = x ^ (x >> 16)
            keep = x >= threshold  # P(keep) = 1 - p
            probs_t = jnp.where(keep, probs_t, jnp.zeros_like(probs_t))
        accs.append(
            jnp.dot(probs_t, v_ref[t], preferred_element_type=jnp.float32)
        )

    out = accs[0] if T == 1 else jnp.concatenate(accs, axis=-1)  # (S, T*D) f32
    if p > 0.0:
        out = out * jnp.float32(1.0 / (1.0 - p))  # scale folded into small output
    out_ref[0] = out


def dropout_matmul(probs, values, *, p=0.1, seed=0, compute_dtype=jnp.bfloat16):
    """probs: [B, H, S, S], values: [B, H, S, D] -> [B, H, S, D] (f32)."""
    B, H, S, S2 = probs.shape
    assert S2 == S
    Bv, Hv, Sv, D = values.shape
    assert (Bv, Hv, Sv) == (B, H, S)
    assert 0.0 <= p < 1.0, "p must be in [0, 1): 1/(1-p) scale would blow up"
    BH = B * H

    # Batch T slabs per grid step, but keep >= 2 steps when possible so the
    # "parallel" grid axis can shard across v7x's two TensorCores.
    T = 1
    for cand in (4, 2):
        if BH % cand == 0 and BH // cand >= 2:
            T = cand
            break
    G = BH // T

    probs_f = probs.reshape(BH, S, S).astype(compute_dtype)
    values_f = values.reshape(BH, S, D).astype(compute_dtype)
    seed_arr = jnp.asarray([seed], dtype=jnp.int32)

    kernel = functools.partial(_dropout_matmul_kernel, p=float(p))

    itemsize = jnp.dtype(compute_dtype).itemsize
    cost = pl.CostEstimate(
        flops=2 * BH * S * S * D,
        transcendentals=0,
        bytes_accessed=(BH * S * S * itemsize      # probs
                        + BH * S * D * itemsize    # values
                        + BH * S * D * 4),         # f32 output
    )

    out_packed = pl.pallas_call(
        kernel,
        out_shape=jax.ShapeDtypeStruct((G, S, T * D), jnp.float32),
        grid_spec=pltpu.PrefetchScalarGridSpec(
            num_scalar_prefetch=1,
            grid=(G,),
            in_specs=[
                pl.BlockSpec((T, S, S), lambda i, seed: (i, 0, 0)),
                pl.BlockSpec((T, S, D), lambda i, seed: (i, 0, 0)),
            ],
            out_specs=pl.BlockSpec((1, S, T * D), lambda i, seed: (i, 0, 0)),
        ),
        compiler_params=pltpu.CompilerParams(
            dimension_semantics=("parallel",),
        ),
        cost_estimate=cost,
    )(seed_arr, probs_f, values_f)

    # Unpack the lane-dense (G, S, T*D) slab back to (B, H, S, D).
    out = (
        out_packed.reshape(G, S, T, D)
        .transpose(0, 2, 1, 3)
        .reshape(B, H, S, D)
    )
    return out


if __name__ == "__main__":
    # Small shapes consistent with the module's [1, 4, 384, 384] x [1, 4, 384, 64]
    B, H, S, D = 1, 4, 128, 64

    key = jax.random.PRNGKey(0)
    k1, k2 = jax.random.split(key)
    x263 = jax.random.normal(k1, (B, H, S, S), dtype=jnp.float32)  # attn probs
    x252 = jax.random.normal(k2, (B, H, S, D), dtype=jnp.float32)  # values

    ref = jnp.einsum("bhqk,bhkd->bhqd", x263, x252)

    # 1) p=0, f32 compute path: dropout is identity -> must match plain einsum.
    out_f32 = dropout_matmul(x263, x252, p=0.0, compute_dtype=jnp.float32)
    assert jnp.allclose(out_f32, ref, atol=1e-3, rtol=1e-3)

    # 2) p=0, bf16 HBM-boundary path: compare against bf16-rounded reference.
    out_bf16 = dropout_matmul(x263, x252, p=0.0)  # default bf16 compute
    ref_bf16 = jnp.einsum(
        "bhqk,bhkd->bhqd",
        x263.astype(jnp.bfloat16).astype(jnp.float32),
        x252.astype(jnp.bfloat16).astype(jnp.float32),
    )
    assert jnp.allclose(out_bf16, ref_bf16, atol=1e-2, rtol=1e-2)

    # 3) Actual module semantics: Dropout(p=0.1) then matmul (stochastic).
    out = dropout_matmul(x263, x252, p=0.1, seed=1234)
    out = jax.block_until_ready(out)
    assert out.shape == (B, H, S, D)
    assert bool(jnp.isfinite(out).all())
    print("KERNEL_OK")
</pallas_src>

<mosaic_0001>
module attributes {stable_mosaic.version = 11 : i64} {
  func.func @_dropout_matmul_kernel(%arg0: i32, %arg1: memref<1xi32, #tpu.memory_space<smem>>, %arg2: memref<2x128x128xf32, #tpu.memory_space<vmem>>, %arg3: memref<2x128x64xf32, #tpu.memory_space<vmem>>, %arg4: memref<1x128x128xf32, #tpu.memory_space<vmem>>) attributes {dimension_semantics = [#tpu.dimension_semantics<parallel>], iteration_bounds = array<i64: 2>, scalar_prefetch = 1 : i64, scratch_operands = 0 : i64, tpu.core_type = #tpu.core_type<tc>, window_params = [{transform_indices = @transform_0, window_bounds = array<i64: 2, 128, 128>}, {transform_indices = @transform_1, window_bounds = array<i64: 2, 128, 64>}, {transform_indices = @transform_2, window_bounds = array<i64: 1, 128, 128>}]} {
    %c0 = arith.constant 0 : index
    %c0_0 = arith.constant 0 : index
    %c0_1 = arith.constant 0 : index
    %0 = vector.load %arg2[%c0, %c0_0, %c0_1] : memref<2x128x128xf32, #tpu.memory_space<vmem>>, vector<1x128x128xf32>
    %1 = vector.shape_cast %0 : vector<1x128x128xf32> to vector<128x128xf32>
    %c0_2 = arith.constant 0 : index
    %c0_3 = arith.constant 0 : index
    %c0_4 = arith.constant 0 : index
    %2 = vector.load %arg3[%c0_2, %c0_3, %c0_4] : memref<2x128x64xf32, #tpu.memory_space<vmem>>, vector<1x128x64xf32>
    %3 = vector.shape_cast %2 : vector<1x128x64xf32> to vector<128x64xf32>
    %cst = arith.constant dense<0.000000e+00> : vector<128x64xf32>
    %4 = tpu.matmul %1, %3, %cst {dimension_numbers = #tpu.dot_dimension_numbers<[1], [0], [0], [1], [0, 0, 1, 1], [], []>} : vector<128x128xf32>, vector<128x64xf32>, vector<128x64xf32> -> vector<128x64xf32>
    %c1 = arith.constant 1 : index
    %c0_5 = arith.constant 0 : index
    %c0_6 = arith.constant 0 : index
    %5 = vector.load %arg2[%c1, %c0_5, %c0_6] : memref<2x128x128xf32, #tpu.memory_space<vmem>>, vector<1x128x128xf32>
    %6 = vector.shape_cast %5 : vector<1x128x128xf32> to vector<128x128xf32>
    %c1_7 = arith.constant 1 : index
    %c0_8 = arith.constant 0 : index
    %c0_9 = arith.constant 0 : index
    %7 = vector.load %arg3[%c1_7, %c0_8, %c0_9] : memref<2x128x64xf32, #tpu.memory_space<vmem>>, vector<1x128x64xf32>
    %8 = vector.shape_cast %7 : vector<1x128x64xf32> to vector<128x64xf32>
    %cst_10 = arith.constant dense<0.000000e+00> : vector<128x64xf32>
    %9 = tpu.matmul %6, %8, %cst_10 {dimension_numbers = #tpu.dot_dimension_numbers<[1], [0], [0], [1], [0, 0, 1, 1], [], []>} : vector<128x128xf32>, vector<128x64xf32>, vector<128x64xf32> -> vector<128x64xf32>
    %10 = tpu.concatenate %4, %9 in 1 : vector<128x64xf32>, vector<128x64xf32> -> vector<128x128xf32>
    %c0_11 = arith.constant 0 : index
    %c0_12 = arith.constant 0 : index
    %c0_13 = arith.constant 0 : index
    %11 = vector.load %arg4[%c0_11, %c0_12, %c0_13] : memref<1x128x128xf32, #tpu.memory_space<vmem>>, vector<1x128x128xf32>
    %12 = vector.shape_cast %11 : vector<1x128x128xf32> to vector<128x128xf32>
    %13 = vector.shape_cast %10 : vector<128x128xf32> to vector<1x128x128xf32>
    tpu.vector_store %arg4[%c0_11, %c0_12, %c0_13], %13 {strides = array<i32>} : memref<1x128x128xf32, #tpu.memory_space<vmem>>, vector<1x128x128xf32>,
    return
  }
  func.func @transform_0(%arg0: i32, %arg1: memref<1xi32, #tpu.memory_space<smem>>) -> (i32, i32, i32) {
    %c0_i32 = arith.constant 0 : i32
    %c0_i32_0 = arith.constant 0 : i32
    %c0_i32_1 = arith.constant 0 : i32
    return %arg0, %c0_i32, %c0_i32_0 : i32, i32, i32
  }
  func.func @transform_1(%arg0: i32, %arg1: memref<1xi32, #tpu.memory_space<smem>>) -> (i32, i32, i32) {
    %c0_i32 = arith.constant 0 : i32
    %c0_i32_0 = arith.constant 0 : i32
    %c0_i32_1 = arith.constant 0 : i32
    return %arg0, %c0_i32, %c0_i32_0 : i32, i32, i32
  }
  func.func @transform_2(%arg0: i32, %arg1: memref<1xi32, #tpu.memory_space<smem>>) -> (i32, i32, i32) {
    %c0_i32 = arith.constant 0 : i32
    %c0_i32_0 = arith.constant 0 : i32
    %c0_i32_1 = arith.constant 0 : i32
    return %arg0, %c0_i32, %c0_i32_0 : i32, i32, i32
  }
}

</mosaic_0001>

<bundles_post_ra>
// kernel: tpu_custom_call.1
= control target key start
LH: loop header
LB: loop body
LE: loop exit
PB: predicated region body
PF: predicated region fallthrough
CT: control target
= control target key end

     0   :  { %9 = vsyncpa [#allocation5], 0  ;;  %s1364_s0 = inlined_call_operand.<no memory space> [shape: s32[1], index: 0, kind: input, shape index: {}]   ;;  %s1365_s1 = inlined_call_operand.vmem [shape: f32[4,128,128], index: 1, kind: input, shape index: {}]   ;;  %s1366_s2 = inlined_call_operand.vmem [shape: f32[4,128,64], index: 2, kind: input, shape index: {}]   ;;  %s1367_s3 = inlined_call_operand.hbm [shape: f32[2,128,128], index: 3, kind: output, shape index: {}]  }
   0x1   :  { %11 = vsyncpa [#allocation5 + $0x1], 0  ;;  %s1136_s12 = smov 0   ;;  %s1138_s13 = smov 0  }
   0x2   :  { %s1140_s14 = smov 0   ;;  %s1142_s15 = smov 0  }
   0x3 LB: > { %s1157_s0 = sadd.s32 4294967295, %s1110_s15   ;;  %s715_s16 = sadd.s32 4294967294, %s1110_s15   ;;  %s1110_s15 = sphi %s1142_s15, %s1373_s15   ;;  %s1106_s14 = sphi %s1140_s14, %s1372_s14   ;;  %s1102_s13 = sphi %s1138_s13, %s1371_s13   ;;  %s1098_s12 = sphi %s1136_s12, %s1370_s12  }
   0x4   : > { %s1161_s17 = sadd.s32 1, %s1110_s15   ;;  %s76_s18 = sadd.s32 1, %s1106_s14 }
   0x5   : > { %s73_s19 = ssub.s32 %s1110_s15, %s1161_s17  ;;  %p86_p0 = scmp.ne.s32.totalorder %s1106_s14, %s1102_s13 }
   0x6   : > { %p74_p1 = scmp.eq.s32.totalorder %s73_s19, 0  ;;  %p87_p2 = scmp.eq.s32.totalorder %s1157_s0, 1 }
   0x7   : > { %p92_p3 = scmp.ne.s32.totalorder %s1102_s13, %s1098_s12  ;;  %p93_p4 = scmp.eq.s32.totalorder %s715_s16, 1 }
   0x8   : > { %s1172_s20 = scalar_select %p74_p1, %s1106_s14, %s76_s18  }
   0x9   : > { %p1174_p5 = por %p87_p2, %p86_p0  ;;  %p1178_p6 = por %p93_p4, %p92_p3 }
   0xa   : > { %p718_p7 = scmp.ge.s32.totalorder %s1110_s15, 1  ;;  %p131_p8 = scmp.lt.s32.totalorder %s1110_s15, 3 }
   0xc   : > { %p132_p9 = pnand %p718_p7, %p131_p8 }
   0xd   : > { %s720_s23 = sshll.u32 (!%p132_p9), %s1157_s0, 1  ;;  %s1112_s4 = smov (!%p132_p9), 64   ;;  %vm594_vm0 = vcmask (!%p132_p9), 523264  }
   0xe   : > { %135 = sbr.rel (%p132_p9) target bundleno = 434 (0x1b2), region = 28  ;;  %p161_p10 = scmp.lt.s32.totalorder (!%p132_p9), %s720_s23, 3 }
   0xf   : > { %s157_s5 = sand.u32 (!%p132_p9), 1, %s1102_s13   ;;  %s765_s8 = sshll.u32 (!%p132_p9), %s1157_s0, 11 }
  0x10   : > { %s719_s6 = sshll.u32 (!%p132_p9), %s157_s5, 7  ;;  %s1315_s16 = scalar_lea.hbm (!%p132_p9), %s1367_s3, %s765_s8 }
  0x11   : > { %s1279_s7 = scalar_lea.vmem (!%p132_p9), [#allocation4], %s719_s6  ;;  %s1323_s0 = scalar_lea.sflag (!%p132_p9), [#allocation5], %s157_s5 }
  0x12   : > { %s641_s9 = sshll.u32 (!%p132_p9), %s1279_s7, 4  ;;  %s1113_s19 = smov (!%p132_p9), [#allocation4]   ;;  %s1317_s9 = int_to_ptr.vmem [resolvable:$true] %s641_s9 }
  0x13   : > { %s1048_s18 = scalar_lea.vmem (!%p132_p9), %s1317_s9, 2048 }
  0x14   : > { %p1049_p11 = scmp.ne.s32.totalorder (!%p132_p9), %s1317_s9, %s1048_s18 }
  0x15   : > { %s1375_s23 = smov (!%p161_p10, %s720_s23), 3 }
  0x16   : > { %s763_s24 = sshll.u32 %s1375_s23, 7  ;;  %p1050_p12 = pnand %p1049_p11, %p1174_p5 }
  0x17   : > { %s1188_s27 = scalar_lea.vmem %s1366_s2, %s763_s24  ;;  %s1199_s30 = scalar_lea.vmem %s1365_s1, %s763_s24 }
  0x18   : > { %v742_v0 = vld [vmem:[%s1188_s27 + $0x80] sm:$0xff]  ;;  %v743_v1 = vld [vmem:[%s1188_s27 + $0x88] sm:$0xff]  ;;  %v744_v2 = vld [vmem:[%s1188_s27 + $0x90] sm:$0xff]  ;;  %p1051_p13 = pneg %p1050_p12  ;;  %s1052_s23 = sshll.u32 %s1113_s19, 4  ;;  %s1053_s23 = int_to_ptr.vmem [resolvable:$false] %s1052_s23 }
  0x19   : > { %v974_v3 = vpack.c.bf16 %v743_v1, %v742_v0  ;;  %v745_v4 = vld [vmem:[%s1188_s27 + $0x98] sm:$0xff]  ;;  %v746_v6 = vld [vmem:[%s1188_s27 + $0xa0] sm:$0xff]  ;;  %v747_v7 = vld [vmem:[%s1188_s27 + $0xa8] sm:$0xff]  ;;  %s1054_s24 = scalar_lea.vmem %s1053_s23, 4096  ;;  %p1055_p0 = scmp.lt.s32.totalorder %s1317_s9, %s1053_s23 }
  0x1a   : > { %v978_v5 = vpack.c.bf16 %v745_v4, %v744_v2  ;;  %v982_v8 = vpack.c.bf16 %v747_v7, %v746_v6  ;;  %v726_v9 = vld [vmem:[%s1199_s30 + $0x80] sm:$0xff]  ;;  %v748_v10 = vld [vmem:[%s1188_s27 + $0xb0] sm:$0xff]  ;;  %v749_v11 = vld [vmem:[%s1188_s27 + $0xb8] sm:$0xff]  ;;  %p1056_p1 = scmp.lt.s32.totalorder %s1054_s24, %s1048_s18 }
  0x1b   : > { %975 = vmatprep.subr.bf16.mxu1 %v974_v3  ;;  %918 = vmatprep.mubr.f32.mxu1 %v726_v9  ;;  %v986_v12 = vpack.c.bf16 %v749_v11, %v748_v10  ;;  %v750_v13 = vld [vmem:[%s1188_s27 + $0xc0] sm:$0xff]  ;;  %v751_v14 = vld [vmem:[%s1188_s27 + $0xc8] sm:$0xff]  ;;  %v192_v17 = vld [vmem:[%s1188_s27 + $0x10] sm:$0xff] }
  0x1c   : > { %977 = vmatpush3.bf16.msra.mxu1 %v974_v3  ;;  %v190_v15 = vld [vmem:[%s1188_s27] sm:$0xff]  ;;  %v191_v16 = vld [vmem:[%s1188_s27 + $0x8] sm:$0xff]  ;;  %v193_v18 = vld [vmem:[%s1188_s27 + $0x18] sm:$0xff]  ;;  %v990_v21 = vpack.c.bf16 %v751_v14, %v750_v13  ;;  %p1057_p2 = por %p1056_p1, %p1055_p0 }
  0x1d   : > { %979 = vmatprep.subr.bf16.mxu1 %v978_v5  ;;  %v942_v19 = vpack.c.bf16 %v191_v16, %v190_v15  ;;  %v946_v20 = vpack.c.bf16 %v193_v18, %v192_v17  ;;  %v194_v22 = vld [vmem:[%s1188_s27 + $0x20] sm:$0xff]  ;;  %v195_v23 = vld [vmem:[%s1188_s27 + $0x28] sm:$0xff]  ;;  %v752_v24 = vld [vmem:[%s1188_s27 + $0xd0] sm:$0xff] }
  0x1e   : > { %v753_v25 = vld [vmem:[%s1188_s27 + $0xd8] sm:$0xff]  ;;  %v950_v26 = vpack.c.bf16 %v195_v23, %v194_v22  ;;  %v174_v27 = vld [vmem:[%s1199_s30] sm:$0xff]  ;;  %v196_v29 = vld [vmem:[%s1188_s27 + $0x30] sm:$0xff]  ;;  %p1058_p3 = pnand %p1057_p2, %p1051_p13 }
  0x1f   : > { %943 = vmatprep.subr.bf16.mxu0 %v942_v19  ;;  %v994_v28 = vpack.c.bf16 %v753_v25, %v752_v24  ;;  %v197_v30 = vld [vmem:[%s1188_s27 + $0x38] sm:$0xff]  ;;  %862 = vmatprep.mubr.f32.mxu0 %v174_v27  ;;  %v754_v31 = vld [vmem:[%s1188_s27 + $0xe0] sm:$0xff]  ;;  %v755_v32 = vld [vmem:[%s1188_s27 + $0xe8] sm:$0xff] }
  0x20   : > { %981 = vmatpush3.bf16.msra.mxu1 %v978_v5  ;;  %945 = vmatpush3.bf16.msra.mxu0 %v942_v19  ;;  %v954_v33 = vpack.c.bf16 %v197_v30, %v196_v29  ;;  %v998_v34 = vpack.c.bf16 %v755_v32, %v754_v31  ;;  %v198_v35 = vld [vmem:[%s1188_s27 + $0x40] sm:$0xff]  ;;  %v199_v36 = vld [vmem:[%s1188_s27 + $0x48] sm:$0xff]  ;;  %v756_v37 = vld [vmem:[%s1188_s27 + $0xf0] sm:$0xff] }
  0x21   : > { %983 = vmatprep.subr.bf16.mxu1 %v982_v8  ;;  %947 = vmatprep.subr.bf16.mxu0 %v946_v20  ;;  %v757_v38 = vld [vmem:[%s1188_s27 + $0xf8] sm:$0xff]  ;;  %v958_v39 = vpack.c.bf16 %v199_v36, %v198_v35  ;;  %v200_v41 = vld [vmem:[%s1188_s27 + $0x50] sm:$0xff]  ;;  %v202_v44 = vld [vmem:[%s1188_s27 + $0x60] sm:$0xff] }
  0x22   : > { %v1002_v40 = vpack.c.bf16 %v757_v38, %v756_v37  ;;  %v201_v42 = vld [vmem:[%s1188_s27 + $0x58] sm:$0xff]  ;;  %v203_v45 = vld [vmem:[%s1188_s27 + $0x68] sm:$0xff]  ;;  %v728_v48 = vld [vmem:[%s1199_s30 + $0x90] sm:$0xff] }
  0x23   : > { %v962_v43 = vpack.c.bf16 %v201_v42, %v200_v41  ;;  %v727_v46 = vld [vmem:[%s1199_s30 + $0x88] sm:$0xff]  ;;  %v966_v47 = vpack.c.bf16 %v203_v45, %v202_v44  ;;  %v204_v49 = vld [vmem:[%s1188_s27 + $0x70] sm:$0xff]  ;;  %v205_v50 = vld [vmem:[%s1188_s27 + $0x78] sm:$0xff] }
  0x24   : > { %985 = vmatpush3.bf16.msra.mxu1 %v982_v8  ;;  %949 = vmatpush3.bf16.msra.mxu0 %v946_v20  ;;  %v729_v51 = vld [vmem:[%s1199_s30 + $0x98] sm:$0xff]  ;;  %v970_v52 = vpack.c.bf16 %v205_v50, %v204_v49  ;;  %v730_v53 = vld [vmem:[%s1199_s30 + $0xa0] sm:$0xff]  ;;  %v731_v54 = vld [vmem:[%s1199_s30 + $0xa8] sm:$0xff] }
  0x25   : > { %987 = vmatprep.subr.bf16.mxu1 %v986_v12  ;;  %951 = vmatprep.subr.bf16.mxu0 %v950_v26  ;;  %v732_v55 = vld [vmem:[%s1199_s30 + $0xb0] sm:$0xff]  ;;  %v175_v56 = vld [vmem:[%s1199_s30 + $0x8] sm:$0xff]  ;;  %v733_v57 = vld [vmem:[%s1199_s30 + $0xb8] sm:$0xff] }
  0x26   : > { %v176_v58 = vld [vmem:[%s1199_s30 + $0x10] sm:$0xff]  ;;  %v734_v59 = vld [vmem:[%s1199_s30 + $0xc0] sm:$0xff]  ;;  %v177_v60 = vld [vmem:[%s1199_s30 + $0x18] sm:$0xff] }
  0x27   : > { %v735_v61 = vld [vmem:[%s1199_s30 + $0xc8] sm:$0xff]  ;;  %v178_v62 = vld [vmem:[%s1199_s30 + $0x20] sm:$0xff]  ;;  %v736_v63 = vld [vmem:[%s1199_s30 + $0xd0] sm:$0xff] }
  0x28   : > { %989 = vmatpush3.bf16.msra.mxu1 %v986_v12  ;;  %953 = vmatpush3.bf16.msra.mxu0 %v950_v26  ;;  %v179_v0 = vld [vmem:[%s1199_s30 + $0x28] sm:$0xff]  ;;  %v737_v1 = vld [vmem:[%s1199_s30 + $0xd8] sm:$0xff]  ;;  %v180_v2 = vld [vmem:[%s1199_s30 + $0x30] sm:$0xff] }
  0x29   : > { %991 = vmatprep.subr.bf16.mxu1 %v990_v21  ;;  %955 = vmatprep.subr.bf16.mxu0 %v954_v33  ;;  %v738_v3 = vld [vmem:[%s1199_s30 + $0xe0] sm:$0xff]  ;;  %v181_v4 = vld [vmem:[%s1199_s30 + $0x38] sm:$0xff]  ;;  %v739_v5 = vld [vmem:[%s1199_s30 + $0xe8] sm:$0xff] }
  0x2a   : > { %v182_v6 = vld [vmem:[%s1199_s30 + $0x40] sm:$0xff]  ;;  %v740_v7 = vld [vmem:[%s1199_s30 + $0xf0] sm:$0xff]  ;;  %v183_v8 = vld [vmem:[%s1199_s30 + $0x48] sm:$0xff] }
  0x2b   : > { %v741_v9 = vld [vmem:[%s1199_s30 + $0xf8] sm:$0xff]  ;;  %v184_v10 = vld [vmem:[%s1199_s30 + $0x50] sm:$0xff]  ;;  %v186_v12 = vld [vmem:[%s1199_s30 + $0x60] sm:$0xff] }
  0x2c   : > { %993 = vmatpush3.bf16.msra.mxu1 %v990_v21  ;;  %957 = vmatpush3.bf16.msra.mxu0 %v954_v33  ;;  %v185_v11 = vld [vmem:[%s1199_s30 + $0x58] sm:$0xff]  ;;  %v187_v13 = vld [vmem:[%s1199_s30 + $0x68] sm:$0xff]  ;;  %v188_v14 = vld [vmem:[%s1199_s30 + $0x70] sm:$0xff] }
  0x2d   : > { %995 = vmatprep.subr.bf16.mxu1 %v994_v28  ;;  %959 = vmatprep.subr.bf16.mxu0 %v958_v39  ;;  %v189_v15 = vld [vmem:[%s1199_s30 + $0x78] sm:$0xff] }
  0x30   : > { %997 = vmatpush3.bf16.msra.mxu1 %v994_v28  ;;  %961 = vmatpush3.bf16.msra.mxu0 %v958_v39 }
  0x31   : > { %999 = vmatprep.subr.bf16.mxu1 %v998_v34  ;;  %963 = vmatprep.subr.bf16.mxu0 %v962_v43 }
  0x34   : > { %1001 = vmatpush3.bf16.msra.mxu1 %v998_v34  ;;  %965 = vmatpush3.bf16.msra.mxu0 %v962_v43 }
  0x35   : > { %1003 = vmatprep.subr.bf16.mxu1 %v1002_v40  ;;  %967 = vmatprep.subr.bf16.mxu0 %v966_v47 }
  0x38   : > { %1005 = vmatpush3.bf16.msra.mxu1 %v1002_v40  ;;  %969 = vmatpush3.bf16.msra.mxu0 %v966_v47 }
  0x39   : > { %971 = vmatprep.subr.bf16.mxu0 %v970_v52 }
  0x3b   : > { %919 = vmatmul.mubr.f32.vlgmr.msra.gmra.mrb[0].mxu1 %v727_v46 }
  0x3c   : > { %921 = vmatprep.mubr.f32.mxu1 %v728_v48  ;;  %973 = vmatpush3.bf16.msra.mxu0 %v970_v52 }
  0x3f   : > { %922 = vmatmul.mubr.f32.gmra.mrb[2].mxu1 %v729_v51  ;;  %863 = vmatmul.mubr.f32.vlgmr.msra.gmra.mrb[0].mxu0 %v175_v56 }
  0x40   : > { %924 = vmatprep.mubr.f32.mxu1 %v730_v53  ;;  %865 = vmatprep.mubr.f32.mxu0 %v176_v58 }
  0x43   : > { %925 = vmatmul.mubr.f32.gmra.mrb[4].mxu1 %v731_v54  ;;  %866 = vmatmul.mubr.f32.gmra.mrb[2].mxu0 %v177_v60 }
  0x44   : > { %927 = vmatprep.mubr.f32.mxu1 %v732_v55  ;;  %868 = vmatprep.mubr.f32.mxu0 %v178_v62 }
  0x47   : > { %928 = vmatmul.mubr.f32.gmra.mrb[6].mxu1 %v733_v57  ;;  %869 = vmatmul.mubr.f32.gmra.mrb[4].mxu0 %v179_v0 }
  0x48   : > { %930 = vmatprep.mubr.f32.mxu1 %v734_v59  ;;  %871 = vmatprep.mubr.f32.mxu0 %v180_v2 }
  0x4b   : > { %931 = vmatmul.mubr.f32.gmra.mrb[8].mxu1 %v735_v61  ;;  %872 = vmatmul.mubr.f32.gmra.mrb[6].mxu0 %v181_v4 }
  0x4c   : > { %933 = vmatprep.mubr.f32.mxu1 %v736_v63  ;;  %874 = vmatprep.mubr.f32.mxu0 %v182_v6 }
  0x4f   : > { %934 = vmatmul.mubr.f32.gmra.mrb[10].mxu1 %v737_v1  ;;  %875 = vmatmul.mubr.f32.gmra.mrb[8].mxu0 %v183_v8 }
  0x50   : > { %936 = vmatprep.mubr.f32.mxu1 %v738_v3  ;;  %877 = vmatprep.mubr.f32.mxu0 %v184_v10 }
  0x53   : > { %937 = vmatmul.mubr.f32.gmra.mrb[12].mxu1 %v739_v5  ;;  %878 = vmatmul.mubr.f32.gmra.mrb[10].mxu0 %v185_v11 }
  0x54   : > { %939 = vmatprep.mubr.f32.mxu1 %v740_v7  ;;  %880 = vmatprep.mubr.f32.mxu0 %v186_v12 }
  0x57   : > { %940 = vmatmul.mubr.f32.gmra.mrb[14].mxu1 %v741_v9  ;;  %881 = vmatmul.mubr.f32.gmra.mrb[12].mxu0 %v187_v13 }
  0x58   : > { %883 = vmatprep.mubr.f32.mxu0 %v188_v14 }
  0x5b   : > { %884 = vmatmul.mubr.f32.gmra.mrb[14].mxu0 %v189_v15 }
 0x10e   : > { %v920_v16 = vpop.f32.mrb[0].mxu1 }
 0x10f   : > { %548 = vrot.lane.b32.xlu0 %v920_v16, %s1112_s4  ;;  %v451_v17 = vpop.f32.mrb[1].mxu1 }
 0x112   : > { %v923_v18 = vpop.f32.mrb[2].mxu1  ;;  %v864_v22 = vpop.f32.mrb[0].mxu0 }
 0x113   : > { %546 = vrot.lane.b32.xlu0 %v451_v17, %s1112_s4  ;;  %552 = vrot.lane.b32.xlu1 %v923_v18, %s1112_s4  ;;  %v461_v19 = vpop.f32.mrb[3].mxu1  ;;  %v272_v24 = vpop.f32.mrb[1].mxu0 }
 0x116   : > { %v926_v20 = vpop.f32.mrb[4].mxu1  ;;  %v867_v26 = vpop.f32.mrb[2].mxu0 }
 0x117   : > { %550 = vrot.lane.b32.xlu1 %v461_v19, %s1112_s4  ;;  %v471_v21 = vpop.f32.mrb[5].mxu1  ;;  %v282_v28 = vpop.f32.mrb[3].mxu0 }
 0x118   : > { %554 = vrot.lane.b32.xlu0 %v471_v21, %s1112_s4 }
 0x11a   : > { %v929_v23 = vpop.f32.mrb[6].mxu1  ;;  %v870_v30 = vpop.f32.mrb[4].mxu0 }
 0x11b   : > { %556 = vrot.lane.b32.xlu1 %v926_v20, %s1112_s4  ;;  %v481_v25 = vpop.f32.mrb[7].mxu1  ;;  %v292_v32 = vpop.f32.mrb[5].mxu0 }
 0x11c   : > { %558 = vrot.lane.b32.xlu0 %v481_v25, %s1112_s4 }
 0x11e   : > { %v932_v27 = vpop.f32.mrb[8].mxu1  ;;  %v873_v34 = vpop.f32.mrb[6].mxu0 }
 0x11f   : > { %560 = vrot.lane.b32.xlu1 %v929_v23, %s1112_s4  ;;  %v491_v29 = vpop.f32.mrb[9].mxu1  ;;  %v302_v36 = vpop.f32.mrb[7].mxu0 }
 0x120   : > { %562 = vrot.lane.b32.xlu0 %v491_v29, %s1112_s4 }
 0x122   : > { %v935_v31 = vpop.f32.mrb[10].mxu1  ;;  %v876_v38 = vpop.f32.mrb[8].mxu0 }
 0x123   : > { %564 = vrot.lane.b32.xlu1 %v932_v27, %s1112_s4  ;;  %v501_v33 = vpop.f32.mrb[11].mxu1  ;;  %v312_v40 = vpop.f32.mrb[9].mxu0 }
 0x124   : > { %566 = vrot.lane.b32.xlu0 %v501_v33, %s1112_s4 }
 0x126   : > { %v938_v35 = vpop.f32.mrb[12].mxu1  ;;  %v879_v42 = vpop.f32.mrb[10].mxu0 }
 0x127   : > { %568 = vrot.lane.b32.xlu1 %v935_v31, %s1112_s4  ;;  %v511_v37 = vpop.f32.mrb[13].mxu1  ;;  %v322_v43 = vpop.f32.mrb[11].mxu0 }
 0x128   : > { %570 = vrot.lane.b32.xlu0 %v511_v37, %s1112_s4 }
 0x12a   : > { %v941_v39 = vpop.f32.mrb[14].mxu1  ;;  %v882_v44 = vpop.f32.mrb[12].mxu0 }
 0x12b   : > { %572 = vrot.lane.b32.xlu1 %v938_v35, %s1112_s4  ;;  %v521_v41 = vpop.f32.mrb[15].mxu1  ;;  %v332_v45 = vpop.f32.mrb[13].mxu0 }
 0x12c   : > { %574 = vrot.lane.b32.xlu0 %v521_v41, %s1112_s4 }
 0x12e   : > { %v885_v46 = vpop.f32.mrb[14].mxu0 }
 0x12f   : > { %576 = vrot.lane.b32.xlu1 %v941_v39, %s1112_s4  ;;  %v342_v47 = vpop.f32.mrb[15].mxu0 }
 0x181   : > { %v549_v48 = vpop.permute.xlu0 %548 }
 0x182   : > { %v596_v49 = vsel %vm594_vm0, %v864_v22, %v549_v48 }
 0x183   : > { %612 = vst [vmem:[%s1279_s7 + $0x8] sm:$0xff] %v596_v49 }
 0x185   : > { %v547_v50 = vpop.permute.xlu0 %546  ;;  %v553_v51 = vpop.permute.xlu1 %552 }
 0x186   : > { %v595_v52 = vsel %vm594_vm0, %v272_v24, %v547_v50  ;;  %v598_v53 = vsel %vm594_vm0, %v867_v26, %v553_v51 }
 0x187   : > { %611 = vst [vmem:[%s1279_s7] sm:$0xff] %v595_v52  ;;  %614 = vst [vmem:[%s1279_s7 + $0x18] sm:$0xff] %v598_v53 }
 0x189   : > { %v551_v54 = vpop.permute.xlu1 %550 }
 0x18a   : > { %v597_v55 = vsel %vm594_vm0, %v282_v28, %v551_v54  ;;  %v555_v56 = vpop.permute.xlu0 %554 }
 0x18b   : > { %613 = vst [vmem:[%s1279_s7 + $0x10] sm:$0xff] %v597_v55  ;;  %v599_v57 = vsel %vm594_vm0, %v292_v32, %v555_v56 }
 0x18c   : > { %615 = vst [vmem:[%s1279_s7 + $0x20] sm:$0xff] %v599_v57 }
 0x18d   : > { %v557_v58 = vpop.permute.xlu1 %556 }
 0x18e   : > { %v600_v59 = vsel %vm594_vm0, %v870_v30, %v557_v58  ;;  %v559_v60 = vpop.permute.xlu0 %558 }
 0x18f   : > { %616 = vst [vmem:[%s1279_s7 + $0x28] sm:$0xff] %v600_v59  ;;  %v601_v61 = vsel %vm594_vm0, %v302_v36, %v559_v60 }
 0x190   : > { %617 = vst [vmem:[%s1279_s7 + $0x30] sm:$0xff] %v601_v61 }
 0x191   : > { %v561_v62 = vpop.permute.xlu1 %560 }
 0x192   : > { %v602_v63 = vsel %vm594_vm0, %v873_v34, %v561_v62  ;;  %v563_v0 = vpop.permute.xlu0 %562 }
 0x193   : > { %618 = vst [vmem:[%s1279_s7 + $0x38] sm:$0xff] %v602_v63  ;;  %v603_v1 = vsel %vm594_vm0, %v312_v40, %v563_v0 }
 0x194   : > { %619 = vst [vmem:[%s1279_s7 + $0x40] sm:$0xff] %v603_v1 }
 0x195   : > { %v565_v2 = vpop.permute.xlu1 %564 }
 0x196   : > { %v604_v3 = vsel %vm594_vm0, %v876_v38, %v565_v2  ;;  %v567_v4 = vpop.permute.xlu0 %566 }
 0x197   : > { %620 = vst [vmem:[%s1279_s7 + $0x48] sm:$0xff] %v604_v3  ;;  %v605_v5 = vsel %vm594_vm0, %v322_v43, %v567_v4 }
 0x198   : > { %621 = vst [vmem:[%s1279_s7 + $0x50] sm:$0xff] %v605_v5 }
 0x199   : > { %v569_v6 = vpop.permute.xlu1 %568 }
 0x19a   : > { %v606_v7 = vsel %vm594_vm0, %v879_v42, %v569_v6  ;;  %v571_v8 = vpop.permute.xlu0 %570 }
 0x19b   : > { %622 = vst [vmem:[%s1279_s7 + $0x58] sm:$0xff] %v606_v7  ;;  %v607_v9 = vsel %vm594_vm0, %v332_v45, %v571_v8 }
 0x19c   : > { %623 = vst [vmem:[%s1279_s7 + $0x60] sm:$0xff] %v607_v9 }
 0x19d   : > { %v573_v10 = vpop.permute.xlu1 %572 }
 0x19e   : > { %v608_v11 = vsel %vm594_vm0, %v882_v44, %v573_v10  ;;  %v575_v12 = vpop.permute.xlu0 %574 }
 0x19f   : > { %624 = vst [vmem:[%s1279_s7 + $0x68] sm:$0xff] %v608_v11  ;;  %v609_v13 = vsel %vm594_vm0, %v342_v47, %v575_v12 }
 0x1a0   : > { %625 = vst [vmem:[%s1279_s7 + $0x70] sm:$0xff] %v609_v13 }
 0x1a1   : > { %v577_v14 = vpop.permute.xlu1 %576 }
 0x1a2   : > { %v610_v15 = vsel %vm594_vm0, %v885_v46, %v577_v14 }
 0x1a3   : > { %626 = vst [vmem:[%s1279_s7 + $0x78] sm:$0xff] %v610_v15 }
 0x1a4   : > { %1061 = shalt.err (!%p1058_p3)
}
 0x1a5   : > { %s1062_s25 = scalar_lea.hbm %s1315_s16, 2048  ;;  %s1066_s28 = scalar_lea.hbm %s1367_s3, 4096 }
 0x1a6   : > { %p1063_p4 = scmp.ne.s32.totalorder %s1315_s16, %s1062_s25  ;;  %p1067_p9 = scmp.lt.u32.totalorder %s1315_s16, %s1367_s3 }
 0x1a7   : > { %p1068_p10 = scmp.lt.u32.totalorder %s1066_s28, %s1062_s25  ;;  %p1070_p12 = scmp.lt.u32.totalorder %s1062_s25, %s1315_s16 }
 0x1a8   : > { %p1064_p7 = pnand %p1063_p4, %p1174_p5 }
 0x1a9   : > { %p1069_p11 = por %p1068_p10, %p1067_p9 }
 0x1aa   : > { %p1065_p8 = pneg %p1064_p7 }
 0x1ab   : > { %p1071_p13 = por %p1070_p12, %p1069_p11 }
 0x1ad   : > { %p1072_p0 = pnand %p1071_p13, %p1065_p8 }
 0x1af   : > { %1075 = shalt.err (!%p1072_p0)
}
 0x1b0   : > { %s1114_s4 = smov 128   ;;  %s1115_s5 = smov 8  }
 0x1b1   : > { %1006 = dma.vmem_to_hbm [thread:$0]  (%p1174_p5), %s1317_s9, 2048, %s1315_s16, %s1323_s0, %s1114_s4, %s1114_s4, %s1115_s5  }
 0x1b2 PF: > { %p1012_p1 = scmp.ge.s32.totalorder %s1110_s15, 2  ;;  %s656_s6 = sand.u32 1, %s1098_s12  }
 0x1b3   : > { %s657_s7 = scalar_lea.sflag [#allocation5], %s656_s6 }
 0x1b4   : > { %p1009_p2 = pnand %p1012_p1, %p1178_p6 }
 0x1b6   : > { %1093 = dma.done.wait (!%p1009_p2), %s657_s7, 2048  }
 0x1b7   : > { %1095 = vsyncadd (!%p1009_p2), %s657_s7, 4294965248  ;;  %p14_p3 = scmp.ge.s32.totalorder %s1161_s17, 4   ;;  %s1370_s12 = smov %s1102_s13 }
 0x1b8   : > { %s1371_s13 = smov %s1106_s14  ;;  %s1372_s14 = smov %s1172_s20 }
 0x1b9   : > { %s1373_s15 = smov %s1161_s17  ;;  %16 = sbr.rel (!%p14_p3) target bundleno = 3 (0x3), region = 68 }
 0x1c0   :  { %662 = vsyncpa [#allocation5], 1 }
 0x1c1   :  { %664 = vsyncpa [#allocation5 + $0x1], 1 }

</bundles_post_ra>
